<compile_context>
chip_gen: v7x
topology: tpu7x:2x2x1
jax: 0.10.0
libtpu: 0.0.40
codegen_flags: <defaults>
</compile_context>

<pallas_src>
import functools

import jax
import jax.numpy as jnp
from jax import lax
from jax.experimental import pallas as pl
from jax.experimental.pallas import tpu as pltpu

LANES = 128
SUBLANES = 8
MAX_TILE_ROWS = 2048  # (2048, 128) f32 block = 1 MiB per input per buffer


def _round_up(a, b):
    return (a + b - 1) // b * b


def _charbonnier_kernel(x_ref, y_ref, o_ref, *, eps, rows, tile_rows,
                        blocks_per_p):
    p = pl.program_id(0)
    i = pl.program_id(1)

    @pl.when(i == 0)
    def _():
        o_ref[...] = jnp.zeros_like(o_ref)

    d = x_ref[...].astype(jnp.float32) - y_ref[...].astype(jnp.float32)
    v = jnp.sqrt(d * d + eps)

    # Mask rows past the end of the (rows, 128) slab: ragged last block and
    # fully out-of-range duplicate blocks on the parallel axis contribute 0.
    row0 = (p * blocks_per_p + i) * tile_rows
    row_ids = lax.broadcasted_iota(jnp.int32, (tile_rows, LANES), 0) + row0
    v = jnp.where(row_ids < rows, v, 0.0)

    # Per-step: only vreg-wise VPU adds into the resident (1, 8, 128)
    # accumulator (output block); the final XLU reduce happens once, outside.
    o_ref[...] += jnp.sum(
        v.reshape(1, tile_rows // SUBLANES, SUBLANES, LANES), axis=1)


def charbonnier_loss(x, y, eps=1e-09):
    assert x.shape == y.shape
    eps = float(eps)
    n = x.size
    x_flat = jnp.ravel(x)
    y_flat = jnp.ravel(y)

    # <128-element tail handled with a trivial jnp expression (no host pad /
    # concatenate pass over the full inputs).
    n_main = (n // LANES) * LANES
    if n_main < n:
        dt = (x_flat[n_main:].astype(jnp.float32)
              - y_flat[n_main:].astype(jnp.float32))
        tail = jnp.sum(jnp.sqrt(dt * dt + eps))
    else:
        tail = jnp.float32(0.0)

    if n_main == 0:  # degenerate tiny input: no kernel work at all
        return (tail / n).astype(jnp.float32)

    rows = n_main // LANES
    if n_main != n:
        x_flat = x_flat[:n_main]
        y_flat = y_flat[:n_main]
    x2d = x_flat.reshape(rows, LANES)
    y2d = y_flat.reshape(rows, LANES)

    itemsize = int(jnp.dtype(x.dtype).itemsize)
    # Sublane packing: 8 rows for 32-bit, 16 for bf16/fp16, 32 for int8/fp8.
    sub_mult = SUBLANES * max(1, 4 // itemsize)
    tile_rows = min(MAX_TILE_ROWS, _round_up(rows, sub_mult))
    num_blocks = -(-rows // tile_rows)
    num_parallel = 2 if num_blocks >= 2 else 1  # both v7x TCs when enough work
    blocks_per_p = -(-num_blocks // num_parallel)

    def in_map(p, i):
        # Clamp so duplicate trailing blocks re-read a valid block (masked to
        # zero inside the kernel) instead of indexing past the array.
        blk = jnp.minimum(p * blocks_per_p + i, num_blocks - 1)
        return (blk, 0)

    kernel = functools.partial(
        _charbonnier_kernel,
        eps=eps, rows=rows, tile_rows=tile_rows, blocks_per_p=blocks_per_p)

    partials = pl.pallas_call(
        kernel,
        out_shape=jax.ShapeDtypeStruct((num_parallel, SUBLANES, LANES),
                                       jnp.float32),
        grid_spec=pltpu.PrefetchScalarGridSpec(
            num_scalar_prefetch=0,
            grid=(num_parallel, blocks_per_p),
            in_specs=[
                pl.BlockSpec((tile_rows, LANES), in_map),
                pl.BlockSpec((tile_rows, LANES), in_map),
            ],
            out_specs=pl.BlockSpec((1, SUBLANES, LANES),
                                   lambda p, i: (p, 0, 0)),
        ),
        compiler_params=pltpu.CompilerParams(
            dimension_semantics=("parallel", "arbitrary")),
        cost_estimate=pl.CostEstimate(
            flops=4 * n, transcendentals=n, bytes_accessed=2 * n * itemsize),
    )(x2d, y2d)

    return ((jnp.sum(partials) + tail) / n).astype(jnp.float32)


if __name__ == "__main__":
    key = jax.random.PRNGKey(0)
    kx, ky = jax.random.split(key)
    x = jax.random.normal(kx, (2, 4, 16, 16), dtype=jnp.float32)  # NCHW
    y = jax.random.normal(ky, (2, 4, 16, 16), dtype=jnp.float32)

    eps = 1e-09
    loss = jax.block_until_ready(charbonnier_loss(x, y, eps=eps))

    # Pure-JAX reference check.
    ref = jnp.mean(jnp.sqrt((x - y) * (x - y) + eps))
    assert jnp.allclose(loss, ref, rtol=1e-5, atol=1e-6), (loss, ref)
    print("KERNEL_OK")
</pallas_src>

<mosaic_0001>
module attributes {stable_mosaic.version = 11 : i64} {
  func.func @_charbonnier_kernel(%arg0: i32, %arg1: i32, %arg2: memref<16x128xf32, #tpu.memory_space<vmem>>, %arg3: memref<16x128xf32, #tpu.memory_space<vmem>>, %arg4: memref<1x8x128xf32, #tpu.memory_space<vmem>>) attributes {dimension_semantics = [#tpu.dimension_semantics<parallel>, #tpu.dimension_semantics<arbitrary>], iteration_bounds = array<i64: 1, 1>, scalar_prefetch = 0 : i64, scratch_operands = 0 : i64, tpu.core_type = #tpu.core_type<tc>, window_params = [{transform_indices = @transform_0, window_bounds = array<i64: 16, 128>}, {transform_indices = @transform_1, window_bounds = array<i64: 16, 128>}, {transform_indices = @transform_2, window_bounds = array<i64: 1, 8, 128>}]} {
    %c0_i32 = arith.constant 0 : i32
    %0 = arith.cmpi eq, %arg1, %c0_i32 : i32
    %1 = arith.extui %0 : i1 to i32
    %c0_i32_0 = arith.constant 0 : i32
    %2 = arith.cmpi ne, %1, %c0_i32_0 : i32
    scf.if %2 {
      %cst_13 = arith.constant 0.000000e+00 : f32
      %25 = vector.broadcast %cst_13 : f32 to vector<1x8x128xf32>
      %c0_14 = arith.constant 0 : index
      %c0_15 = arith.constant 0 : index
      %c0_16 = arith.constant 0 : index
      %26 = vector.load %arg4[%c0_14, %c0_15, %c0_16] : memref<1x8x128xf32, #tpu.memory_space<vmem>>, vector<1x8x128xf32>
      tpu.vector_store %arg4[%c0_14, %c0_15, %c0_16], %25 {strides = array<i32>} : memref<1x8x128xf32, #tpu.memory_space<vmem>>, vector<1x8x128xf32>,
    } else {
    }
    %c0 = arith.constant 0 : index
    %c0_1 = arith.constant 0 : index
    %3 = vector.load %arg2[%c0, %c0_1] : memref<16x128xf32, #tpu.memory_space<vmem>>, vector<16x128xf32>
    %c0_2 = arith.constant 0 : index
    %c0_3 = arith.constant 0 : index
    %4 = vector.load %arg3[%c0_2, %c0_3] : memref<16x128xf32, #tpu.memory_space<vmem>>, vector<16x128xf32>
    %5 = arith.subf %3, %4 : vector<16x128xf32>
    %6 = arith.mulf %5, %5 : vector<16x128xf32>
    %cst = arith.constant 9.99999971E-10 : f32
    %7 = vector.broadcast %cst : f32 to vector<16x128xf32>
    %8 = arith.addf %6, %7 : vector<16x128xf32>
    %9 = math.sqrt %8 : vector<16x128xf32>
    %c1_i32 = arith.constant 1 : i32
    %10 = arith.muli %arg0, %c1_i32 : i32
    %11 = arith.addi %10, %arg1 : i32
    %c16_i32 = arith.constant 16 : i32
    %12 = arith.muli %11, %c16_i32 : i32
    %13 = tpu.iota {dimensions = array<i32: 0>} : vector<16x128xi32>
    %14 = vector.broadcast %12 : i32 to vector<16x128xi32>
    %15 = arith.addi %13, %14 : vector<16x128xi32>
    %c16_i32_4 = arith.constant 16 : i32
    %16 = vector.broadcast %c16_i32_4 : i32 to vector<16x128xi32>
    %17 = arith.cmpi slt, %15, %16 : vector<16x128xi32>
    %cst_5 = arith.constant 0.000000e+00 : f32
    %18 = vector.broadcast %cst_5 : f32 to vector<16x128xf32>
    %19 = arith.select %17, %9, %18 : vector<16x128xi1>, vector<16x128xf32>
    %c0_6 = arith.constant 0 : index
    %c0_7 = arith.constant 0 : index
    %c0_8 = arith.constant 0 : index
    %20 = vector.load %arg4[%c0_6, %c0_7, %c0_8] : memref<1x8x128xf32, #tpu.memory_space<vmem>>, vector<1x8x128xf32>
    %21 = vector.shape_cast %19 : vector<16x128xf32> to vector<1x2x8x128xf32>
    %cst_9 = arith.constant dense<0.000000e+00> : vector<1x8x128xf32>
    %22 = vector.multi_reduction <add>, %21, %cst_9 [1] : vector<1x2x8x128xf32> to vector<1x8x128xf32>
    %23 = arith.addf %20, %22 : vector<1x8x128xf32>
    %c0_10 = arith.constant 0 : index
    %c0_11 = arith.constant 0 : index
    %c0_12 = arith.constant 0 : index
    %24 = vector.load %arg4[%c0_10, %c0_11, %c0_12] : memref<1x8x128xf32, #tpu.memory_space<vmem>>, vector<1x8x128xf32>
    tpu.vector_store %arg4[%c0_10, %c0_11, %c0_12], %23 {strides = array<i32>} : memref<1x8x128xf32, #tpu.memory_space<vmem>>, vector<1x8x128xf32>,
    return
  }
  func.func @transform_0(%arg0: i32, %arg1: i32) -> (i32, i32) {
    %c1_i32 = arith.constant 1 : i32
    %0 = arith.muli %arg0, %c1_i32 : i32
    %1 = arith.addi %0, %arg1 : i32
    %c0_i32 = arith.constant 0 : i32
    %2 = arith.minsi %1, %c0_i32 : i32
    %c0_i32_0 = arith.constant 0 : i32
    %c0_i32_1 = arith.constant 0 : i32
    return %2, %c0_i32_0 : i32, i32
  }
  func.func @transform_1(%arg0: i32, %arg1: i32) -> (i32, i32) {
    %c1_i32 = arith.constant 1 : i32
    %0 = arith.muli %arg0, %c1_i32 : i32
    %1 = arith.addi %0, %arg1 : i32
    %c0_i32 = arith.constant 0 : i32
    %2 = arith.minsi %1, %c0_i32 : i32
    %c0_i32_0 = arith.constant 0 : i32
    %c0_i32_1 = arith.constant 0 : i32
    return %2, %c0_i32_0 : i32, i32
  }
  func.func @transform_2(%arg0: i32, %arg1: i32) -> (i32, i32, i32) {
    %c0_i32 = arith.constant 0 : i32
    %c0_i32_0 = arith.constant 0 : i32
    %c0_i32_1 = arith.constant 0 : i32
    return %arg0, %c0_i32, %c0_i32_0 : i32, i32, i32
  }
}

</mosaic_0001>

<bundles_post_ra>
// kernel: tpu_custom_call.1
= control target key start
LH: loop header
LB: loop body
LE: loop exit
PB: predicated region body
PF: predicated region fallthrough
CT: control target
= control target key end

     0   :  { %7 = vsyncpa [#allocation3], 0  ;;  %s263_s0 = inlined_call_operand.hbm [shape: f32[16,128], index: 0, kind: input, shape index: {}]   ;;  %s264_s1 = inlined_call_operand.hbm [shape: f32[16,128], index: 1, kind: input, shape index: {}]   ;;  %s265_s2 = inlined_call_operand.hbm [shape: f32[1,8,128], index: 2, kind: output, shape index: {}]  }
   0x1   :  { %8 = vsyncpa [#allocation6], 0 }
   0x2   :  { %9 = vsyncpa [#allocation4], 0  ;;  %s207_s9 = smov [#allocation2]   ;;  %s135_s13 = scalar_lea.hbm %s263_s0, 256 }
   0x3   :  { %s21_s10 = sshll.u32 %s207_s9, 4  ;;  %p136_p0 = scmp.ne.s32.totalorder %s263_s0, %s135_s13  ;;  %s22_s10 = int_to_ptr.vmem [resolvable:$true] %s21_s10 }
   0x4   :  { %p139_p1 = scmp.lt.u32.totalorder %s135_s13, %s263_s0 }
   0x6   :  { %p141_p2 = pnand %p139_p1, %p136_p0 }
   0x8   :  { %144 = shalt.err (!%p141_p2)
}
   0x9   :  { %s145_s18 = scalar_lea.vmem %s22_s10, 256  ;;  %p150_p4 = scmp.lt.s32.totalorder %s22_s10, %s22_s10 }
   0xa   :  { %p146_p3 = scmp.ne.s32.totalorder %s22_s10, %s145_s18  ;;  %p151_p5 = scmp.lt.s32.totalorder %s145_s18, %s145_s18 }
   0xc   :  { %p152_p6 = por %p151_p5, %p150_p4 }
   0xe   :  { %p153_p7 = pnand %p152_p6, %p146_p3 }
  0x10   :  { %156 = shalt.err (!%p153_p7)
}
  0x11   :  { %s208_s19 = smov 128   ;;  %s209_s20 = smov 8  }
  0x12   :  { %27 = dma.hbm_to_vmem [thread:$0]  %s263_s0, 256, %s22_s10, [#allocation3], %s208_s19, %s208_s19, %s209_s20  }
  0x13   :  { %s210_s23 = smov [#allocation5]   ;;  %s157_s27 = scalar_lea.hbm %s264_s1, 256 }
  0x14   :  { %s39_s24 = sshll.u32 %s210_s23, 4  ;;  %p158_p8 = scmp.ne.s32.totalorder %s264_s1, %s157_s27  ;;  %s40_s24 = int_to_ptr.vmem [resolvable:$true] %s39_s24 }
  0x15   :  { %p161_p9 = scmp.lt.u32.totalorder %s157_s27, %s264_s1 }
  0x17   :  { %p163_p10 = pnand %p161_p9, %p158_p8 }
  0x19   :  { %166 = shalt.err (!%p163_p10)
}
  0x1a   :  { %s167_s4 = scalar_lea.vmem %s40_s24, 256  ;;  %p172_p12 = scmp.lt.s32.totalorder %s40_s24, %s40_s24 }
  0x1b   :  { %p168_p11 = scmp.ne.s32.totalorder %s40_s24, %s167_s4  ;;  %p173_p13 = scmp.lt.s32.totalorder %s167_s4, %s167_s4 }
  0x1d   :  { %p174_p0 = por %p173_p13, %p172_p12 }
  0x1f   :  { %p175_p1 = pnand %p174_p0, %p168_p11 }
  0x21   :  { %178 = shalt.err (!%p175_p1)
}
  0x22   :  { %45 = dma.hbm_to_vmem [thread:$0]  %s264_s1, 256, %s40_s24, [#allocation6], %s208_s19, %s208_s19, %s209_s20  }
  0x23   :  { %201 = dma.done.wait [#allocation3], 256  }
  0x24   :  { %202 = vsyncadd [#allocation3], 4294967040 }
  0x25   :  { %203 = dma.done.wait [#allocation6], 256  }
  0x26   :  { %204 = vsyncadd [#allocation6], 4294967040  ;;  %v65_v0 = vld [vmem:[#allocation2] sm:$0xff]  ;;  %v66_v1 = vld [vmem:[#allocation2 + $0x8] sm:$0xff]  ;;  %s211_s1 = smov [#allocation7]  }
  0x27   :  { %v67_v2 = vld [vmem:[#allocation5] sm:$0xff]  ;;  %v68_v3 = vld [vmem:[#allocation5 + $0x8] sm:$0xff]  ;;  %s111_s6 = sshll.u32 %s211_s1, 4  ;;  %s112_s6 = int_to_ptr.vmem [resolvable:$true] %s111_s6 }
  0x28   :  { %v69_v4 = vsub.f32 %v65_v0, %v67_v2  ;;  %v70_v5 = vsub.f32 %v66_v1, %v68_v3  ;;  %s179_s7 = scalar_lea.vmem %s112_s6, 128  ;;  %p184_p3 = scmp.lt.s32.totalorder %s112_s6, %s112_s6 }
  0x29   :  { %p180_p2 = scmp.ne.s32.totalorder %s112_s6, %s179_s7  ;;  %p185_p4 = scmp.lt.s32.totalorder %s179_s7, %s179_s7 }
  0x2a   :  { %v71_v6 = vmul.f32 %v69_v4, %v69_v4  ;;  %v72_v7 = vmul.f32 %v70_v5, %v70_v5 }
  0x2b   :  { %p186_p5 = por %p185_p4, %p184_p3 }
  0x2c   :  { %v73_v8 = vadd.f32 1e-09, %v71_v6  ;;  %v74_v9 = vadd.f32 1e-09, %v72_v7 }
  0x2d   :  { %p187_p6 = pnand %p186_p5, %p180_p2 }
  0x2e   :  { %131 = vrsqrt.f32 %v73_v8  ;;  %vm77_vm0 = vcmp.eq.f32.partialorder %v73_v8, inf  ;;  %v80_v11 = vand.u32 2147483648, %v73_v8  ;;  %vm79_vm1 = vcmp.eq.f32.partialorder %v73_v8, 0.0 }
  0x2f   :  { %133 = vrsqrt.f32 %v74_v9  ;;  %vm84_vm2 = vcmp.eq.f32.partialorder %v74_v9, inf  ;;  %v87_v14 = vand.u32 2147483648, %v74_v9  ;;  %vm86_vm3 = vcmp.eq.f32.partialorder %v74_v9, 0.0 }
  0x38   :  { %v132_v10 = vpop.eup %131 }
  0x39   :  { %v134_v12 = vpop.eup %133  ;;  %v76_v13 = vmul.f32 %v132_v10, %v73_v8 }
  0x3a   :  { %v83_v15 = vmul.f32 %v134_v12, %v74_v9 }
  0x3b   :  { %v78_v16 = vsel %vm77_vm0, %v73_v8, %v76_v13 }
  0x3c   :  { %v81_v17 = vsel %vm79_vm1, %v80_v11, %v78_v16  ;;  %v85_v18 = vsel %vm84_vm2, %v74_v9, %v83_v15 }
  0x3d   :  { %v88_v19 = vsel %vm86_vm3, %v87_v14, %v85_v18 }
  0x3e   :  { %v102_v20 = vadd.f32 %v88_v19, %v81_v17 }
  0x40   :  { %104 = vst [vmem:[#allocation7] sm:$0xff] %v102_v20 }
  0x41   :  { %190 = shalt.err (!%p187_p6)
}
  0x42   :  { %s191_s10 = scalar_lea.hbm %s265_s2, 128 }
  0x43   :  { %p192_p7 = scmp.ne.s32.totalorder %s265_s2, %s191_s10  ;;  %p195_p8 = scmp.lt.u32.totalorder %s191_s10, %s265_s2 }
  0x45   :  { %p197_p9 = pnand %p195_p8, %p192_p7 }
  0x47   :  { %200 = shalt.err (!%p197_p9)
}
  0x48   :  { %114 = dma.vmem_to_hbm [thread:$0]  %s112_s6, 128, %s265_s2, [#allocation4]  }
  0x49   :  { %205 = dma.done.wait [#allocation4], 128  }
  0x4a   :  { %206 = vsyncadd [#allocation4], 4294967168 }
  0x4b   :  { %118 = vsyncpa [#allocation3], 1 }
  0x4c   :  { %119 = vsyncpa [#allocation6], 1 }
  0x4d   :  { %120 = vsyncpa [#allocation4], 1 }

</bundles_post_ra>
